<compile_context>
chip_gen: v7x
topology: tpu7x:2x2x1
jax: 0.10.0
libtpu: 0.0.40
codegen_flags: <defaults>
</compile_context>

<pallas_src>
import jax
import jax.numpy as jnp
from jax.experimental import pallas as pl
from jax.experimental.pallas import tpu as pltpu

_NEG_BIG = -1e30  # bias for padded vocab columns (never wins the max / lse)


def _proj_logsoftmax_kernel(x_ref, w_ref, b_ref, o_ref, m_ref, l_ref):
    """One (TM, TV) tile of log_softmax(x @ W + b, axis=-1).

    Grid: (row_tiles, pass, vocab_tiles).  Pass 0 accumulates the running
    (max, sum-exp); pass 1 recomputes the logits tile and writes normalized
    log-probs.  m_ref / l_ref are (TM, 1) f32 VMEM scratch persisting across
    the pass/vocab axes of one row tile.
    """
    p = pl.program_id(1)
    j = pl.program_id(2)

    # bf16 x / W on the MXU with f32 accumulation; epilogue math in f32.
    logits = jnp.dot(x_ref[...], w_ref[...],
                     preferred_element_type=jnp.float32) + b_ref[...]

    @pl.when(jnp.logical_and(p == 0, j == 0))
    def _init():
        m_ref[...] = jnp.full(m_ref.shape, -jnp.inf, jnp.float32)
        l_ref[...] = jnp.zeros(l_ref.shape, jnp.float32)

    @pl.when(p == 0)
    def _accumulate():
        m_prev = m_ref[...]
        m_new = jnp.maximum(m_prev, jnp.max(logits, axis=-1, keepdims=True))
        l_ref[...] = (l_ref[...] * jnp.exp(m_prev - m_new)
                      + jnp.sum(jnp.exp(logits - m_new), axis=-1,
                                keepdims=True))
        m_ref[...] = m_new

    @pl.when(jnp.logical_and(p == 1, j == 0))
    def _fold_lse():
        # Fold the running sum into m once: m <- logsumexp(logits, axis=-1).
        m_ref[...] = m_ref[...] + jnp.log(l_ref[...])

    @pl.when(p == 1)
    def _write():
        o_ref[...] = (logits - m_ref[...]).astype(o_ref.dtype)


def _round_up(x, m):
    return (x + m - 1) // m * m


def _vmem_capacity_bytes():
    try:
        info = pltpu.get_tpu_info()
        cap = getattr(info, "vmem_capacity_bytes", None)
        if cap:
            return int(cap)
    except Exception:
        pass
    return 64 << 20  # conservative fallback (v7x per-TensorCore VMEM)


def _choose_tiles(m, d, v, budget, x_bytes, w_bytes, out_bytes):
    """VMEM-budget-driven (TM, TV, bytes_needed).

    TV is a lane-dense multiple of 128 (target 2048); TM prefers multiples of
    256 (feeds the 2x256^2 MXU on v6e/v7x) when the budget allows.
    """
    tv_full = _round_up(v, 128)
    tv = min(tv_full, 2048)
    tm_cap = _round_up(m, 8)

    def need(tm, tv):
        return (2 * tm * d * x_bytes        # x tile (double-buffered)
                + 2 * d * tv * w_bytes      # weight tile (double-buffered)
                + 2 * tv * 4                # bias tile
                + 2 * tm * tv * out_bytes   # output tile (double-buffered)
                + tm * tv * 4               # f32 logits intermediate
                + 8 * tm)                   # running max / sum scratch

    tm = 8
    for cand in (512, 256, 128, 64, 32, 16, 8):
        if cand <= tm_cap and need(cand, tv) <= budget:
            tm = cand
            break
    while tv > 128 and need(tm, tv) > budget:
        tv -= 128
    return tm, tv, need(tm, tv)


def projection_forward(x, w_t, bias, *, out_dtype=None):
    """log_softmax(x @ w_t + bias, axis=-1) as a Pallas TPU kernel.

    x:    (..., d_model)
    w_t:  (d_model, vocab)  -- nn.Linear weight pre-transposed ONCE at
                               parameter-prep time (not per forward call).
    bias: (vocab,)
    out_dtype: output dtype (defaults to x.dtype; pass bf16 to halve the
               mem-bound writeback on v5e/v6e if downstream tolerates it).
    """
    orig_shape = x.shape
    d_model, vocab = w_t.shape
    out_dtype = x.dtype if out_dtype is None else out_dtype
    out_bytes = jnp.dtype(out_dtype).itemsize

    m = 1
    for s in orig_shape[:-1]:
        m *= s

    vmem_cap = _vmem_capacity_bytes()
    tm, tv, need_bytes = _choose_tiles(
        m, d_model, vocab, int(vmem_cap * 0.6),
        x_bytes=2, w_bytes=2, out_bytes=out_bytes)

    m_pad = _round_up(m, tm)
    v_pad = _round_up(vocab, tv)

    # bf16 matmul operands (f32 accumulation inside the kernel); f32 bias.
    x2 = x.reshape(m, d_model).astype(jnp.bfloat16)
    wk = w_t.astype(jnp.bfloat16)
    b2 = bias.astype(jnp.float32).reshape(1, vocab)

    if m_pad != m:
        x2 = jnp.pad(x2, ((0, m_pad - m), (0, 0)))
    if v_pad != vocab:
        wk = jnp.pad(wk, ((0, 0), (0, v_pad - vocab)))
        b2 = jnp.pad(b2, ((0, 0), (0, v_pad - vocab)),
                     constant_values=_NEG_BIG)

    n_rows = m_pad // tm
    n_vtiles = v_pad // tv
    grid = (n_rows, 2, n_vtiles)

    vmem_limit = min(max(need_bytes + (8 << 20), 32 << 20),
                     int(vmem_cap * 0.85))

    cost = pl.CostEstimate(
        flops=2 * 2 * m_pad * d_model * v_pad,       # matmul in both passes
        transcendentals=m_pad * v_pad + m_pad,       # exp (pass 0) + log
        bytes_accessed=(2 * n_rows * d_model * v_pad * 2   # weight, 2 passes
                        + m_pad * d_model * 2               # x (bf16)
                        + 2 * n_rows * v_pad * 4            # bias, 2 passes
                        + m_pad * v_pad * out_bytes),       # output write
    )

    out = pl.pallas_call(
        _proj_logsoftmax_kernel,
        out_shape=jax.ShapeDtypeStruct((m_pad, v_pad), out_dtype),
        grid=grid,
        in_specs=[
            # x row tile: index constant across pass/vocab -> stays resident.
            pl.BlockSpec((tm, d_model), lambda i, p, j: (i, 0)),
            # weight vocab tile: streamed (double-buffered by default).
            pl.BlockSpec((d_model, tv), lambda i, p, j: (0, j)),
            # bias vocab tile.
            pl.BlockSpec((1, tv), lambda i, p, j: (0, j)),
        ],
        # Pin the output block to (i, 0) during pass 0 so no un-finalized
        # block is ever flushed to HBM; pass 1 walks the vocab tiles.
        out_specs=pl.BlockSpec((tm, tv), lambda i, p, j: (i, p * j)),
        scratch_shapes=[
            pltpu.VMEM((tm, 1), jnp.float32),   # running max
            pltpu.VMEM((tm, 1), jnp.float32),   # running sum-exp
        ],
        compiler_params=pltpu.CompilerParams(
            dimension_semantics=("parallel", "arbitrary", "arbitrary"),
            vmem_limit_bytes=vmem_limit,
        ),
        cost_estimate=cost,
    )(x2, wk, b2)

    out = out[:m, :vocab]
    return out.reshape(*orig_shape[:-1], vocab)


def _reference(x, weight, bias):
    # Same bf16-quantized operands as the kernel, f32 accumulation.
    xq = x.astype(jnp.bfloat16).astype(jnp.float32)
    wq = weight.astype(jnp.bfloat16).astype(jnp.float32)
    logits = jnp.einsum("...d,vd->...v", xq, wq,
                        precision=jax.lax.Precision.HIGHEST) + bias
    return jax.nn.log_softmax(logits, axis=-1)


if __name__ == "__main__":
    key = jax.random.PRNGKey(0)
    kx, kw, kb = jax.random.split(key, 3)

    # Small shapes consistent with the module: (batch, seq, d_model) -> vocab.
    B, S, D, V = 2, 8, 32, 128
    x = jax.random.normal(kx, (B, S, D), dtype=jnp.float32)

    # nn.Linear default init: U(-1/sqrt(D), 1/sqrt(D)), weight layout (V, D).
    bound = 1.0 / (D ** 0.5)
    weight = jax.random.uniform(kw, (V, D), jnp.float32, -bound, bound)
    bias = jax.random.uniform(kb, (V,), jnp.float32, -bound, bound)

    # One-time parameter prep (hoisted out of the per-forward path).
    w_t = jnp.transpose(weight)                      # (d_model, vocab)

    out = projection_forward(x, w_t, bias)
    out = jax.block_until_ready(out)
    assert out.shape == (B, S, V)

    ref = _reference(x, weight, bias)
    assert jnp.allclose(out, ref, atol=2e-3, rtol=2e-3), "mismatch vs reference"
    assert jnp.allclose(jnp.sum(jnp.exp(out), axis=-1), 1.0, atol=1e-3)

    # Ragged-shape check (exercises row/vocab padding + masked -1e30 bias).
    B2, S2, D2, V2 = 1, 3, 20, 130
    x_r = jax.random.normal(kx, (B2, S2, D2), dtype=jnp.float32)
    w_r = jax.random.uniform(kw, (V2, D2), jnp.float32, -0.2, 0.2)
    b_r = jax.random.uniform(kb, (V2,), jnp.float32, -0.2, 0.2)
    out_r = jax.block_until_ready(projection_forward(x_r, jnp.transpose(w_r), b_r))
    ref_r = _reference(x_r, w_r, b_r)
    assert out_r.shape == (B2, S2, V2)
    assert jnp.allclose(out_r, ref_r, atol=2e-3, rtol=2e-3), "ragged mismatch"
    assert jnp.allclose(jnp.sum(jnp.exp(out_r), axis=-1), 1.0, atol=1e-3)

    print("KERNEL_OK")
</pallas_src>

<mosaic_0001>
module attributes {stable_mosaic.version = 11 : i64} {
  func.func @_proj_logsoftmax_kernel(%arg0: i32, %arg1: i32, %arg2: i32, %arg3: memref<16x32xbf16, #tpu.memory_space<vmem>>, %arg4: memref<32x128xbf16, #tpu.memory_space<vmem>>, %arg5: memref<1x128xf32, #tpu.memory_space<vmem>>, %arg6: memref<16x128xf32, #tpu.memory_space<vmem>>, %arg7: memref<16x1xf32, #tpu.memory_space<vmem>>, %arg8: memref<16x1xf32, #tpu.memory_space<vmem>>) attributes {dimension_semantics = [#tpu.dimension_semantics<parallel>, #tpu.dimension_semantics<arbitrary>, #tpu.dimension_semantics<arbitrary>], iteration_bounds = array<i64: 1, 2, 1>, scalar_prefetch = 0 : i64, scratch_operands = 2 : i64, tpu.core_type = #tpu.core_type<tc>, window_params = [{transform_indices = @transform_0, window_bounds = array<i64: 16, 32>}, {transform_indices = @transform_1, window_bounds = array<i64: 32, 128>}, {transform_indices = @transform_2, window_bounds = array<i64: 1, 128>}, {transform_indices = @transform_3, window_bounds = array<i64: 16, 128>}]} {
    %c0 = arith.constant 0 : index
    %c0_0 = arith.constant 0 : index
    %0 = vector.load %arg3[%c0, %c0_0] : memref<16x32xbf16, #tpu.memory_space<vmem>>, vector<16x32xbf16>
    %c0_1 = arith.constant 0 : index
    %c0_2 = arith.constant 0 : index
    %1 = vector.load %arg4[%c0_1, %c0_2] : memref<32x128xbf16, #tpu.memory_space<vmem>>, vector<32x128xbf16>
    %cst = arith.constant dense<0.000000e+00> : vector<16x128xf32>
    %2 = tpu.matmul %0, %1, %cst {dimension_numbers = #tpu.dot_dimension_numbers<[1], [0], [0], [1], [0, 0, 1, 1], [], []>} : vector<16x32xbf16>, vector<32x128xbf16>, vector<16x128xf32> -> vector<16x128xf32>
    %c0_3 = arith.constant 0 : index
    %c0_4 = arith.constant 0 : index
    %3 = vector.load %arg5[%c0_3, %c0_4] : memref<1x128xf32, #tpu.memory_space<vmem>>, vector<1x128xf32>
    %4 = vector.broadcast %3 : vector<1x128xf32> to vector<16x128xf32>
    %5 = arith.addf %2, %4 : vector<16x128xf32>
    %c0_i32 = arith.constant 0 : i32
    %6 = arith.cmpi eq, %arg1, %c0_i32 : i32
    %c0_i32_5 = arith.constant 0 : i32
    %7 = arith.cmpi eq, %arg2, %c0_i32_5 : i32
    %8 = arith.andi %6, %7 : i1
    %9 = arith.extui %8 : i1 to i32
    %c0_i32_6 = arith.constant 0 : i32
    %10 = arith.cmpi ne, %9, %c0_i32_6 : i32
    scf.if %10 {
      %cst_13 = arith.constant 0xFF800000 : f32
      %22 = vector.broadcast %cst_13 : f32 to vector<16x1xf32>
      %c0_14 = arith.constant 0 : index
      %c0_15 = arith.constant 0 : index
      %23 = vector.load %arg7[%c0_14, %c0_15] : memref<16x1xf32, #tpu.memory_space<vmem>>, vector<16x1xf32>
      tpu.vector_store %arg7[%c0_14, %c0_15], %22 {strides = array<i32>} : memref<16x1xf32, #tpu.memory_space<vmem>>, vector<16x1xf32>,
      %cst_16 = arith.constant 0.000000e+00 : f32
      %24 = vector.broadcast %cst_16 : f32 to vector<16x1xf32>
      %c0_17 = arith.constant 0 : index
      %c0_18 = arith.constant 0 : index
      %25 = vector.load %arg8[%c0_17, %c0_18] : memref<16x1xf32, #tpu.memory_space<vmem>>, vector<16x1xf32>
      tpu.vector_store %arg8[%c0_17, %c0_18], %24 {strides = array<i32>} : memref<16x1xf32, #tpu.memory_space<vmem>>, vector<16x1xf32>,
    } else {
    }
    %c0_i32_7 = arith.constant 0 : i32
    %11 = arith.cmpi eq, %arg1, %c0_i32_7 : i32
    %12 = arith.extui %11 : i1 to i32
    %c0_i32_8 = arith.constant 0 : i32
    %13 = arith.cmpi ne, %12, %c0_i32_8 : i32
    scf.if %13 {
      %c0_13 = arith.constant 0 : index
      %c0_14 = arith.constant 0 : index
      %22 = vector.load %arg7[%c0_13, %c0_14] : memref<16x1xf32, #tpu.memory_space<vmem>>, vector<16x1xf32>
      %cst_15 = arith.constant dense<0xFF800000> : vector<16xf32>
      %23 = vector.multi_reduction <maximumf>, %5, %cst_15 [1] : vector<16x128xf32> to vector<16xf32>
      %24 = vector.shape_cast %23 : vector<16xf32> to vector<16x1xf32>
      %25 = arith.maximumf %22, %24 : vector<16x1xf32>
      %c0_16 = arith.constant 0 : index
      %c0_17 = arith.constant 0 : index
      %26 = vector.load %arg8[%c0_16, %c0_17] : memref<16x1xf32, #tpu.memory_space<vmem>>, vector<16x1xf32>
      %27 = arith.subf %22, %25 : vector<16x1xf32>
      %28 = math.exp %27 : vector<16x1xf32>
      %29 = arith.mulf %26, %28 : vector<16x1xf32>
      %30 = vector.broadcast %25 : vector<16x1xf32> to vector<16x128xf32>
      %31 = arith.subf %5, %30 : vector<16x128xf32>
      %32 = math.exp %31 : vector<16x128xf32>
      %cst_18 = arith.constant dense<0.000000e+00> : vector<16xf32>
      %33 = vector.multi_reduction <add>, %32, %cst_18 [1] : vector<16x128xf32> to vector<16xf32>
      %34 = vector.shape_cast %33 : vector<16xf32> to vector<16x1xf32>
      %35 = arith.addf %29, %34 : vector<16x1xf32>
      %c0_19 = arith.constant 0 : index
      %c0_20 = arith.constant 0 : index
      %36 = vector.load %arg8[%c0_19, %c0_20] : memref<16x1xf32, #tpu.memory_space<vmem>>, vector<16x1xf32>
      tpu.vector_store %arg8[%c0_19, %c0_20], %35 {strides = array<i32>} : memref<16x1xf32, #tpu.memory_space<vmem>>, vector<16x1xf32>,
      %c0_21 = arith.constant 0 : index
      %c0_22 = arith.constant 0 : index
      %37 = vector.load %arg7[%c0_21, %c0_22] : memref<16x1xf32, #tpu.memory_space<vmem>>, vector<16x1xf32>
      tpu.vector_store %arg7[%c0_21, %c0_22], %25 {strides = array<i32>} : memref<16x1xf32, #tpu.memory_space<vmem>>, vector<16x1xf32>,
    } else {
    }
    %c1_i32 = arith.constant 1 : i32
    %14 = arith.cmpi eq, %arg1, %c1_i32 : i32
    %c0_i32_9 = arith.constant 0 : i32
    %15 = arith.cmpi eq, %arg2, %c0_i32_9 : i32
    %16 = arith.andi %14, %15 : i1
    %17 = arith.extui %16 : i1 to i32
    %c0_i32_10 = arith.constant 0 : i32
    %18 = arith.cmpi ne, %17, %c0_i32_10 : i32
    scf.if %18 {
      %c0_13 = arith.constant 0 : index
      %c0_14 = arith.constant 0 : index
      %22 = vector.load %arg7[%c0_13, %c0_14] : memref<16x1xf32, #tpu.memory_space<vmem>>, vector<16x1xf32>
      %c0_15 = arith.constant 0 : index
      %c0_16 = arith.constant 0 : index
      %23 = vector.load %arg8[%c0_15, %c0_16] : memref<16x1xf32, #tpu.memory_space<vmem>>, vector<16x1xf32>
      %24 = math.log %23 : vector<16x1xf32>
      %25 = arith.addf %22, %24 : vector<16x1xf32>
      %c0_17 = arith.constant 0 : index
      %c0_18 = arith.constant 0 : index
      %26 = vector.load %arg7[%c0_17, %c0_18] : memref<16x1xf32, #tpu.memory_space<vmem>>, vector<16x1xf32>
      tpu.vector_store %arg7[%c0_17, %c0_18], %25 {strides = array<i32>} : memref<16x1xf32, #tpu.memory_space<vmem>>, vector<16x1xf32>,
    } else {
    }
    %c1_i32_11 = arith.constant 1 : i32
    %19 = arith.cmpi eq, %arg1, %c1_i32_11 : i32
    %20 = arith.extui %19 : i1 to i32
    %c0_i32_12 = arith.constant 0 : i32
    %21 = arith.cmpi ne, %20, %c0_i32_12 : i32
    scf.if %21 {
      %c0_13 = arith.constant 0 : index
      %c0_14 = arith.constant 0 : index
      %22 = vector.load %arg7[%c0_13, %c0_14] : memref<16x1xf32, #tpu.memory_space<vmem>>, vector<16x1xf32>
      %23 = vector.broadcast %22 : vector<16x1xf32> to vector<16x128xf32>
      %24 = arith.subf %5, %23 : vector<16x128xf32>
      %c0_15 = arith.constant 0 : index
      %c0_16 = arith.constant 0 : index
      %25 = vector.load %arg6[%c0_15, %c0_16] : memref<16x128xf32, #tpu.memory_space<vmem>>, vector<16x128xf32>
      tpu.vector_store %arg6[%c0_15, %c0_16], %24 {strides = array<i32>} : memref<16x128xf32, #tpu.memory_space<vmem>>, vector<16x128xf32>,
    } else {
    }
    return
  }
  func.func @transform_0(%arg0: i32, %arg1: i32, %arg2: i32) -> (i32, i32) {
    %c0_i32 = arith.constant 0 : i32
    %c0_i32_0 = arith.constant 0 : i32
    return %arg0, %c0_i32 : i32, i32
  }
  func.func @transform_1(%arg0: i32, %arg1: i32, %arg2: i32) -> (i32, i32) {
    %c0_i32 = arith.constant 0 : i32
    %c0_i32_0 = arith.constant 0 : i32
    return %c0_i32, %arg2 : i32, i32
  }
  func.func @transform_2(%arg0: i32, %arg1: i32, %arg2: i32) -> (i32, i32) {
    %c0_i32 = arith.constant 0 : i32
    %c0_i32_0 = arith.constant 0 : i32
    return %c0_i32, %arg2 : i32, i32
  }
  func.func @transform_3(%arg0: i32, %arg1: i32, %arg2: i32) -> (i32, i32) {
    %0 = arith.muli %arg1, %arg2 : i32
    %c0_i32 = arith.constant 0 : i32
    return %arg0, %0 : i32, i32
  }
}

</mosaic_0001>

<bundles_post_ra>
// kernel: tpu_custom_call.1
= control target key start
LH: loop header
LB: loop body
LE: loop exit
PB: predicated region body
PF: predicated region fallthrough
CT: control target
= control target key end

     0   :  { %8 = vsyncpa [#allocation5], 0  ;;  %s950_s0 = inlined_call_operand.hbm [shape: bf16[16,32], index: 0, kind: input, shape index: {}]   ;;  %s951_s1 = inlined_call_operand.hbm [shape: bf16[32,128], index: 1, kind: input, shape index: {}]   ;;  %s952_s2 = inlined_call_operand.vmem [shape: f32[1,128], index: 2, kind: input, shape index: {}]   ;;  %s953_s3 = inlined_call_operand.hbm [shape: f32[16,128], index: 3, kind: output, shape index: {}]  }
   0x1   :  { %9 = vsyncpa [#allocation8], 0 }
   0x2   :  { %10 = vsyncpa [#allocation6], 0 }
   0x3   :  { %12 = vsyncpa [#allocation6 + $0x1], 0  ;;  %s794_s12 = smov 0   ;;  %s796_s13 = smov 0  }
   0x4   :  { %s798_s14 = smov 0  }
   0x5 LB: > { %s523_s15 = sadd.s32 4294967295, %s759_s14   ;;  %s524_s16 = sadd.s32 4294967294, %s759_s14   ;;  %s759_s14 = sphi %s798_s14, %s18_s14   ;;  %s755_s13 = sphi %s796_s13, %s964_s13   ;;  %s751_s12 = sphi %s794_s12, %s963_s12  }
   0x6   : > { %s33_s17 = sadd.s32 1, %s755_s13  ;;  %p525_p0 = scmp.ge.s32.totalorder %s759_s14, 1 }
   0x7   : > { %p35_p1 = scmp.ge.s32.totalorder %s33_s17, 2  ;;  %p150_p2 = scmp.lt.s32.totalorder %s759_s14, 3 }
   0x8   : > { %p816_p3 = scmp.eq.s32.totalorder %s523_s15, 0  ;;  %s761_s20 = smov [#allocation4]  }
   0x9   : > { %s966_s17 = smov (%p35_p1, %s33_s17), 0  ;;  %p822_p4 = pnand %p525_p0, %p150_p2 }
   0xa   : > { %s957_s18 = scalar_select %p816_p3, 1, 0 }
   0xb   : > { %s958_s19 = scalar_select %p822_p4, 1, 0 }
   0xc   : > { %s165_s21 = sshll.u32 %s761_s20, 4  ;;  %p570_p5 = pneg %p822_p4  ;;  %s166_s21 = int_to_ptr.vmem [resolvable:$true] %s165_s21 }
   0xd   : > { %s762_s23 = smov [#allocation7]   ;;  %s643_s27 = scalar_lea.hbm %s950_s0, 128 }
   0xe   : > { %p830_p6 = pnand %p816_p3, %p570_p5  ;;  %s180_s24 = sshll.u32 %s762_s23, 4  ;;  %s834_s24 = int_to_ptr.vmem [resolvable:$true] %s180_s24 }
   0xf   : > { %p644_p7 = scmp.ne.s32.totalorder %s950_s0, %s643_s27  ;;  %p650_p11 = scmp.lt.u32.totalorder %s643_s27, %s950_s0 }
  0x10   : > { %p645_p8 = pneg %p830_p6 }
  0x12   : > { %p646_p9 = pnand %p645_p8, %p644_p7 }
  0x14   : > { %p647_p10 = pneg %p646_p9 }
  0x16   : > { %p652_p12 = pnand %p650_p11, %p647_p10 }
  0x18   : > { %655 = shalt.err (!%p652_p12)
}
  0x19   : > { %s656_s5 = scalar_lea.vmem %s166_s21, 128  ;;  %p664_p2 = scmp.lt.s32.totalorder %s166_s21, %s166_s21 }
  0x1a   : > { %p657_p13 = scmp.ne.s32.totalorder %s166_s21, %s656_s5  ;;  %p665_p5 = scmp.lt.s32.totalorder %s656_s5, %s656_s5 }
  0x1c   : > { %p659_p0 = pnand %p657_p13, %p645_p8  ;;  %p666_p3 = por %p665_p5, %p664_p2 }
  0x1e   : > { %p660_p1 = pneg %p659_p0 }
  0x20   : > { %p667_p4 = pnand %p666_p3, %p660_p1 }
  0x22   : > { %670 = shalt.err (!%p667_p4)
}
  0x23   : > { %s763_s6 = smov 64   ;;  %s764_s7 = smov 4  }
  0x24   : > { %573 = dma.hbm_to_vmem [thread:$0]  (!%p830_p6), %s950_s0, 128, %s166_s21, [#allocation5], %s763_s6, %s763_s6, %s764_s7  }
  0x25   : > { %s671_s20 = scalar_lea.hbm %s951_s1, 256 }
  0x26   : > { %p672_p7 = scmp.ne.s32.totalorder %s951_s1, %s671_s20  ;;  %p678_p9 = scmp.lt.u32.totalorder %s671_s20, %s951_s1 }
  0x28   : > { %p674_p3 = pnand %p672_p7, %p645_p8 }
  0x2a   : > { %p675_p4 = pneg %p674_p3 }
  0x2c   : > { %p680_p10 = pnand %p678_p9, %p675_p4 }
  0x2e   : > { %683 = shalt.err (!%p680_p10)
}
  0x2f   : > { %s684_s21 = scalar_lea.vmem %s834_s24, 256  ;;  %p692_p0 = scmp.lt.s32.totalorder %s834_s24, %s834_s24 }
  0x30   : > { %p685_p11 = scmp.ne.s32.totalorder %s834_s24, %s684_s21  ;;  %p693_p1 = scmp.lt.s32.totalorder %s684_s21, %s684_s21 }
  0x32   : > { %p687_p12 = pnand %p685_p11, %p645_p8  ;;  %p694_p2 = por %p693_p1, %p692_p0 }
  0x34   : > { %p688_p13 = pneg %p687_p12 }
  0x36   : > { %p695_p5 = pnand %p694_p2, %p688_p13 }
  0x38   : > { %698 = shalt.err (!%p695_p5)
}
  0x39   : > { %576 = dma.hbm_to_vmem [thread:$0]  (!%p830_p6), %s951_s1, 256, %s834_s24, [#allocation8], %s763_s6, %s763_s6, %s764_s7  }
  0x3a   : > { %p960_p7 = scmp.ne.s32.totalorder %s958_s19, 0 }
  0x3b   : > { %p961_p3 = scmp.ne.s32.totalorder (!%p960_p7), %s957_s18, 0 }
  0x3c   : > { %202 = sbr.rel (%p960_p7) target bundleno = 916 (0x394), region = 32 }
  0x43   : > { %738 = dma.done.wait (%p961_p3), [#allocation5], 128  }
  0x44   : > { %740 = vsyncadd (%p961_p3), [#allocation5], 4294967168 }
  0x45   : > { %742 = dma.done.wait (%p961_p3), [#allocation8], 256  }
  0x46   : > { %744 = vsyncadd (%p961_p3), [#allocation8], 4294967040  ;;  %v765_v0 = vmov 0.0   ;;  %vm766_vm0 = vmmov 0   ;;  %v625_v1 = vld [vmem:[#allocation7] sm:$0xff]   ;;  %v626_v2 = vld [vmem:[#allocation7 + $0x8] sm:$0xff]  }
  0x47   : > { %550 = vmatprep.subr.bf16.mxu0 %v765_v0  ;;  %554 = vmatprep.mubr.msk.bf16.mxu0 %vm766_vm0, %v765_v0  ;;  %v627_v3 = vld [vmem:[#allocation4] sm:$0xff]   ;;  %vm265_vm1 = vcmask 261120   ;;  %p310_p6 = scmp.eq.s32.totalorder %s751_s12, 0 }
  0x48   : > { %551 = vmatpush3.bf16.msra.mxu0 %v625_v1  ;;  %v532_v4 = vld [vmem:[%s952_s2] ss:$0 sm:$0xff]  ;;  %vm316_vm2 = vcmask (%p310_p6), 7168   ;;  %v767_v11 = vmov (%p310_p6), -inf   ;;  %v768_v12 = vmov (%p310_p6), 0.0  }
  0x49   : > { %552 = vmatprep.subr.bf16.mxu0 %v765_v0  ;;  %317 = vst.msk [vmem:[#allocation2] sm:$0xff] (%p310_p6), %vm316_vm2, %v767_v11  ;;  %318 = vst.msk [vmem:[#allocation2 + $0x8] sm:$0xff] (%p310_p6), %vm316_vm2, %v767_v11 }
  0x4a   : > { %319 = vst.msk [vmem:[#allocation3] sm:$0xff] (%p310_p6), %vm316_vm2, %v768_v12  ;;  %320 = vst.msk [vmem:[#allocation3 + $0x8] sm:$0xff] (%p310_p6), %vm316_vm2, %v768_v12 }
  0x4c   : > { %553 = vmatpush3.bf16.msra.mxu0 %v626_v2 }
  0x4f   : > { %555 = vmatmul.mubr.msk.bf16.vlgmr.msra.gmra.mrb[0].mxu0 %vm265_vm1, %v627_v3 }
 0x11f   : > { %315 = sbr.rel (!%p310_p6) target bundleno = 294 (0x126), region = 44 }
 0x122   : > { %v303_v5 = vpop.f32.mrb[0].mxu0 }
 0x123   : > { %v897_v6 = vadd.f32 %v532_v4, %v303_v5  ;;  %v556_v7 = vpop.f32.mrb[1].mxu0 }
 0x124   : > { %v306_v8 = vpop.f32.mrb[2].mxu0 }
 0x125   : > { %v899_v9 = vadd.f32 %v532_v4, %v306_v8  ;;  %v557_v10 = vpop.f32.mrb[3].mxu0 }
 0x126 PF: > { %p538_p8 = scmp.ne.s32.totalorder %s751_s12, 0 }
 0x127   : > { %326 = vmax.xlane.f32.xlu0 (!%p538_p8), %v897_v6  ;;  %v769_v13 = vmov (!%p538_p8), 0   ;;  %v324_v14 = vld [vmem:[#allocation2] sm:$0xff] (!%p538_p8)  ;;  %vm364_vm3 = vcmask (!%p538_p8), 7168   ;;  %v325_v17 = vld [vmem:[#allocation2 + $0x8] sm:$0xff] (!%p538_p8)  ;;  %v332_v33 = vld [vmem:[#allocation3] sm:$0xff] (!%p538_p8) }
 0x128   : > { %323 = sbr.rel (%p538_p8) target bundleno = 731 (0x2db), region = 48  ;;  %628 = vset.pattern.permute.xlu1 (!%p538_p8), %v769_v13  ;;  %629 = vset.pattern.permute.xlu0 (!%p538_p8), %v769_v13  ;;  %v333_v37 = vld [vmem:[#allocation3 + $0x8] sm:$0xff] (!%p538_p8) }
 0x12b   : > { %328 = vmax.xlane.f32.xlu0 (!%p538_p8), %v899_v9 }
 0x1b4   : > { %v327_v15 = vpop.xlane.xlu0 %326 }
 0x1b5   : > { %v330_v16 = vmax.f32 %v324_v14, %v327_v15 }
 0x1b7   : > { %v334_v18 = vsub.f32 %v324_v14, %v330_v16  ;;  %367 = vst.msk [vmem:[#allocation2] sm:$0xff] %vm364_vm3, %v330_v16  ;;  %344 = vperm.xlu1 %628, %v330_v16  }
 0x1b8   : > { %v329_v19 = vpop.xlane.xlu0 %328 }
 0x1b9   : > { %v331_v20 = vmax.f32 %v325_v17, %v329_v19  ;;  %v336_v30 = vmul.f32 1.442695, %v334_v18 }
 0x1bb   : > { %v335_v21 = vsub.f32 %v325_v17, %v331_v20  ;;  %368 = vst.msk [vmem:[#allocation2 + $0x8] sm:$0xff] %vm364_vm3, %v331_v20  ;;  %349 = vperm.xlu1 %628, %v331_v20  }
 0x1bd   : > { %v338_v31 = vmul.f32 1.442695, %v335_v21 }
 0x236   : > { %v345_v22 = vpop.permute.xlu1 %344 }
 0x237   : > { %v352_v23 = vsub.f32 %v897_v6, %v345_v22 }
 0x239   : > { %v354_v24 = vmul.f32 1.442695, %v352_v23 }
 0x23a   : > { %v350_v25 = vpop.permute.xlu1 %349 }
 0x23b   : > { %630 = vpow2.f32 %v354_v24  ;;  %v353_v26 = vsub.f32 %v899_v9, %v350_v25 }
 0x23d   : > { %v356_v27 = vmul.f32 1.442695, %v353_v26 }
 0x23f   : > { %632 = vpow2.f32 %v356_v27 }
 0x240   : > { %634 = vpow2.f32 %v336_v30 }
 0x241   : > { %636 = vpow2.f32 %v338_v31 }
 0x245   : > { %v631_v28 = vpop.eup %630 }
 0x246   : > { %358 = vadd.xlane.f32.xlu0 %v631_v28 }
 0x249   : > { %v633_v29 = vpop.eup %632 }
 0x24a   : > { %360 = vadd.xlane.f32.xlu1 %v633_v29  ;;  %v635_v32 = vpop.eup %634 }
 0x24b   : > { %v340_v34 = vmul.f32 %v635_v32, %v332_v33  ;;  %v637_v35 = vpop.eup %636 }
 0x24c   : > { %v341_v39 = vmul.f32 %v637_v35, %v333_v37 }
 0x2d3   : > { %v359_v36 = vpop.xlane.xlu0 %358 }
 0x2d4   : > { %v362_v38 = vadd.f32 %v359_v36, %v340_v34 }
 0x2d6   : > { %365 = vst.msk [vmem:[#allocation3] sm:$0xff] %vm364_vm3, %v362_v38 }
 0x2d7   : > { %v361_v40 = vpop.xlane.xlu1 %360 }
 0x2d8   : > { %v363_v41 = vadd.f32 %v361_v40, %v341_v39 }
 0x2da   : > { %366 = vst.msk [vmem:[#allocation3 + $0x8] sm:$0xff] %vm364_vm3, %v363_v41 }
 0x2db PF: > { %p369_p4 = scmp.eq.s32.totalorder %s751_s12, 1 }
 0x2dc   : > { %v374_v45 = vld [vmem:[#allocation2] sm:$0xff] (%p369_p4)  ;;  %v375_v48 = vld [vmem:[#allocation2 + $0x8] sm:$0xff] (%p369_p4)  ;;  %vm384_vm4 = vcmask (%p369_p4), 7168  }
 0x2dd   : > { %373 = sbr.rel (!%p369_p4) target bundleno = 754 (0x2f2), region = 52  ;;  %v376_v42 = vld [vmem:[#allocation3] sm:$0xff] (%p369_p4) }
 0x2de   : > { %638 = vlog2.f32 (%p369_p4), %v376_v42 }
 0x2e1   : > { %v377_v43 = vld [vmem:[#allocation3 + $0x8] sm:$0xff] (%p369_p4) }
 0x2e2   : > { %640 = vlog2.f32 (%p369_p4), %v377_v43 }
 0x2e8   : > { %v639_v44 = vpop.eup %638 }
 0x2e9   : > { %v379_v47 = vmul.f32 0.6931472, %v639_v44 }
 0x2eb   : > { %v382_v50 = vadd.f32 %v379_v47, %v374_v45 }
 0x2ec   : > { %v641_v46 = vpop.eup %640 }
 0x2ed   : > { %v381_v49 = vmul.f32 0.6931472, %v641_v46  ;;  %385 = vst.msk [vmem:[#allocation2] sm:$0xff] %vm384_vm4, %v382_v50 }
 0x2ef   : > { %v383_v51 = vadd.f32 %v381_v49, %v375_v48 }
 0x2f1   : > { %386 = vst.msk [vmem:[#allocation2 + $0x8] sm:$0xff] %vm384_vm4, %v383_v51 }
 0x2f2 PF: > { %p540_p9 = scmp.ne.s32.totalorder %s751_s12, 1 }
 0x2f3   : > { %v770_v53 = vmov (!%p540_p9), 0  }
 0x2f4   : > { %389 = sbr.rel (%p540_p9) target bundleno = 892 (0x37c), region = 56  ;;  %v390_v52 = vld [vmem:[#allocation2] sm:$0xff] (!%p540_p9)  ;;  %642 = vset.pattern.permute.xlu0 (!%p540_p9), %v770_v53 }
 0x2f5   : > { %394 = vperm.xlu0 (!%p540_p9), %642, %v390_v52  }
 0x2f8   : > { %v391_v54 = vld [vmem:[#allocation2 + $0x8] sm:$0xff] (!%p540_p9) }
 0x2f9   : > { %399 = vperm.xlu0 (!%p540_p9), %642, %v391_v54  }
 0x374   : > { %v395_v55 = vpop.permute.xlu0 %394 }
 0x375   : > { %v402_v56 = vsub.f32 %v897_v6, %v395_v55 }
 0x377   : > { %404 = vst [vmem:[#allocation9] sm:$0xff] %v402_v56 }
 0x378   : > { %v400_v57 = vpop.permute.xlu0 %399 }
 0x379   : > { %v403_v58 = vsub.f32 %v899_v9, %v400_v57 }
 0x37b   : > { %405 = vst [vmem:[#allocation9 + $0x8] sm:$0xff] %v403_v58 }
 0x37c PF: > { %p916_p10 = scmp.eq.s32.totalorder %s523_s15, 1  ;;  %s771_s18 = smov [#allocation9]  }
 0x37d   : > { %s422_s24 = sshll.u32 %s771_s18, 4  ;;  %s423_s24 = int_to_ptr.vmem [resolvable:$true] %s422_s24 }
 0x37e   : > { %s699_s30 = scalar_lea.vmem %s423_s24, 256  ;;  %s705_s4 = scalar_lea.vmem %s423_s24, 512 }
 0x37f   : > { %p700_p11 = scmp.ne.s32.totalorder %s423_s24, %s699_s30  ;;  %p706_p0 = scmp.lt.s32.totalorder %s423_s24, %s423_s24 }
 0x380   : > { %p707_p1 = scmp.lt.s32.totalorder %s705_s4, %s699_s30 }
 0x381   : > { %p701_p12 = pnand %p700_p11, %p916_p10 }
 0x382   : > { %p708_p2 = por %p707_p1, %p706_p0 }
 0x383   : > { %p702_p13 = pneg %p701_p12 }
 0x385   : > { %p709_p5 = pnand %p708_p2, %p702_p13 }
 0x387   : > { %712 = shalt.err (!%p709_p5)
}
 0x388   : > { %s713_s6 = scalar_lea.hbm %s953_s3, 256 }
 0x389   : > { %p714_p7 = scmp.ne.s32.totalorder %s953_s3, %s713_s6  ;;  %p719_p8 = scmp.lt.u32.totalorder %s713_s6, %s953_s3 }
 0x38b   : > { %p715_p3 = pnand %p714_p7, %p916_p10 }
 0x38d   : > { %p716_p6 = pneg %p715_p3 }
 0x38f   : > { %p721_p4 = pnand %p719_p8, %p716_p6 }
 0x391   : > { %724 = shalt.err (!%p721_p4)
}
 0x392   : > { %s772_s11 = smov 128   ;;  %s773_s20 = smov 8  }
 0x393   : > { %567 = dma.vmem_to_hbm [thread:$0]  (%p916_p10), %s423_s24, 256, %s953_s3, [#allocation6], %s772_s11, %s772_s11, %s773_s20  }
 0x394 PF: > { %p586_p9 = scmp.ge.s32.totalorder %s759_s14, 2  ;;  %p587_p11 = scmp.eq.s32.totalorder %s524_s16, 1 }
 0x396   : > { %p578_p12 = pnand %p587_p11, %p586_p9 }
 0x398   : > { %746 = dma.done.wait (!%p578_p12), [#allocation6], 256  }
 0x399   : > { %748 = vsyncadd (!%p578_p12), [#allocation6], 4294967040  ;;  %s18_s14 = sadd.s32 1, %s759_s14   ;;  %s963_s12 = smov %s755_s13 }
 0x39a   : > { %p15_p13 = scmp.ge.s32.totalorder %s18_s14, 4   ;;  %s964_s13 = smov %s966_s17 }
 0x39c   :  { %17 = sbr.rel (!%p15_p13) target bundleno = 5 (0x5), region = 94 }
 0x3a3   :  { %443 = vsyncpa [#allocation5], 1 }
 0x3a4   :  { %445 = vsyncpa [#allocation5 + $0x1], 1 }
 0x3a5   :  { %446 = vsyncpa [#allocation8], 1 }
 0x3a6   :  { %447 = vsyncpa [#allocation6], 1 }
 0x3a7   :  { %449 = vsyncpa [#allocation6 + $0x1], 1 }

</bundles_post_ra>
